<compile_context>
chip_gen: v7x
topology: tpu7x:2x2x1
jax: 0.10.0
libtpu: 0.0.40
codegen_flags: <defaults>
</compile_context>

<pallas_src>
import functools
import math

import jax
import jax.numpy as jnp
from jax.experimental import pallas as pl
from jax.experimental.pallas import tpu as pltpu


def _round_up(x, m):
    return (x + m - 1) // m * m


def _cdiv(a, b):
    return -(-a // b)


# ----------------------------------------------------------------------------
# Kernels
# ----------------------------------------------------------------------------
def _dense_relu_kernel_1k(x_ref, w_ref, b_ref, o_ref, *, relu):
    """Single K step: dot + bias + ReLU straight to the output tile."""
    out = jnp.dot(
        x_ref[...].astype(jnp.bfloat16),  # f32 -> bf16 on the VPU, hidden under MXU
        w_ref[...],
        preferred_element_type=jnp.float32,
    ) + b_ref[...]
    if relu:
        out = jnp.maximum(out, 0.0)
    o_ref[...] = out.astype(o_ref.dtype)


def _dense_relu_kernel(x_ref, w_ref, b_ref, o_ref, acc_ref, *, relu, n_k):
    """Multi K step: f32 VMEM accumulator, bias folded into the init."""
    k = pl.program_id(2)

    @pl.when(k == 0)
    def _():
        acc_ref[...] = jnp.zeros_like(acc_ref) + b_ref[...]  # (1, tn) broadcast

    acc_ref[...] += jnp.dot(
        x_ref[...].astype(jnp.bfloat16),
        w_ref[...],
        preferred_element_type=jnp.float32,
    )

    @pl.when(k == n_k - 1)
    def _():
        out = acc_ref[...]
        if relu:
            out = jnp.maximum(out, 0.0)
        o_ref[...] = out.astype(o_ref.dtype)


# ----------------------------------------------------------------------------
# Tile selection (runs at trace time; all inputs are static Python ints)
# ----------------------------------------------------------------------------
def _pick_tiles(M, K, N, vmem_budget_bytes):
    Mp = _round_up(M, 8)
    Kp = _round_up(K, 128)
    Np = _round_up(N, 128)

    # N tiling: single tile up to 512 lanes, otherwise 256-wide tiles
    # (v6e/v7x MXU is 256x256; 128-multiples already saturate v5e's 4x128 MXU).
    if Np <= 512:
        tn = Np
    else:
        tn = 256
        Np = _round_up(Np, tn)

    # M tiling: single tile up to 512 rows, otherwise 256-row tiles.
    if Mp <= 512:
        tm = Mp
    else:
        tm = 256
        Mp = _round_up(Mp, tm)

    # v7x megacore balance: if there would be exactly one parallel (i, j) tile
    # and M is big enough, split M in two so both TensorCores get work.
    if (Mp // tm) * (Np // tn) == 1 and Mp >= 128:
        tm = _round_up(_cdiv(Mp, 2), 8)
        Mp = 2 * tm

    # K tiling: fattest tk (multiple of 128) whose double-buffered working set
    # fits the VMEM budget.  x tile is f32 (cast to bf16 in-kernel), w is bf16.
    def vmem_bytes(tk, multi_k):
        b = 2 * (tm * tk * 4 + tk * tn * 2 + tm * tn * 4) + Np * 4
        if multi_k:
            b += tm * tn * 4  # f32 accumulator scratch
        return b

    n_k = 1
    while True:
        tk = _round_up(_cdiv(Kp, n_k), 128)
        if tk <= 128 or vmem_bytes(tk, n_k > 1) <= vmem_budget_bytes:
            break
        n_k += 1
    tk = max(tk, 128)
    n_k = _cdiv(Kp, tk)
    Kp = n_k * tk

    return Mp, Kp, Np, tm, tk, tn, n_k


# ----------------------------------------------------------------------------
# Wrapper: Dense_L forward  ==  ReLU(x @ W + b)   (W passed as (K, N))
# ----------------------------------------------------------------------------
@functools.partial(jax.jit, static_argnames=("relu", "vmem_budget_bytes"))
def _dense_l_impl(x, w, b, relu, vmem_budget_bytes):
    orig_shape = x.shape
    K = orig_shape[-1]
    N = w.shape[1]
    M = math.prod(orig_shape[:-1]) if len(orig_shape) > 1 else 1
    x2 = x.reshape(M, K)

    Mp, Kp, Np, tm, tk, tn, n_k = _pick_tiles(M, K, N, vmem_budget_bytes)

    # Activation stays f32 (padded only if needed); cast to bf16 inside kernel.
    xp = x2 if (Mp, Kp) == (M, K) else jnp.pad(x2, ((0, Mp - M), (0, Kp - K)))
    # Weight: single bf16 cast (static parameter), padded only if needed.
    wb = w.astype(jnp.bfloat16)
    wp = wb if (Kp, Np) == (K, N) else jnp.pad(wb, ((0, Kp - K), (0, Np - N)))
    bf = b.astype(jnp.float32).reshape(1, N)
    bp = bf if Np == N else jnp.pad(bf, ((0, 0), (0, Np - N)))

    if n_k == 1:
        grid = (Mp // tm, Np // tn)
        kernel = functools.partial(_dense_relu_kernel_1k, relu=relu)
        in_specs = [
            pl.BlockSpec((tm, tk), lambda i, j: (i, 0)),
            pl.BlockSpec((tk, tn), lambda i, j: (0, j)),
            pl.BlockSpec((1, tn), lambda i, j: (0, j)),
        ]
        out_specs = pl.BlockSpec((tm, tn), lambda i, j: (i, j))
        scratch = []
        dims = ("parallel", "parallel")
    else:
        grid = (Mp // tm, Np // tn, n_k)
        kernel = functools.partial(_dense_relu_kernel, relu=relu, n_k=n_k)
        # TODO(synk): if profiling shows exposed DMA on the K-streamed tiles,
        # add pipeline_mode=pl.Buffered(3) to the x/w BlockSpecs.
        in_specs = [
            pl.BlockSpec((tm, tk), lambda i, j, k: (i, k)),
            pl.BlockSpec((tk, tn), lambda i, j, k: (k, j)),
            pl.BlockSpec((1, tn), lambda i, j, k: (0, j)),
        ]
        out_specs = pl.BlockSpec((tm, tn), lambda i, j, k: (i, j))
        scratch = [pltpu.VMEM((tm, tn), jnp.float32)]
        dims = ("parallel", "parallel", "arbitrary")

    out = pl.pallas_call(
        kernel,
        out_shape=jax.ShapeDtypeStruct((Mp, Np), jnp.float32),
        grid_spec=pltpu.PrefetchScalarGridSpec(
            num_scalar_prefetch=0,
            grid=grid,
            in_specs=in_specs,
            out_specs=out_specs,
            scratch_shapes=scratch,
        ),
        compiler_params=pltpu.CompilerParams(
            dimension_semantics=dims,
            vmem_limit_bytes=32 * 1024 * 1024,
        ),
    )(xp, wp, bp)

    if (Mp, Np) != (M, N):
        out = out[:M, :N]
    return out.reshape(orig_shape[:-1] + (N,))


def dense_l(x, w, b, *, relu=True, vmem_budget_bytes=20 * 1024 * 1024):
    """Dense_L forward: ReLU(x @ w + b).

    x: (..., K) float32, w: (K, N) (PyTorch weight transposed), b: (N,).
    Returns (..., N) float32.
    """
    return _dense_l_impl(x, w, b, relu, vmem_budget_bytes)


# ----------------------------------------------------------------------------
# Self-test
# ----------------------------------------------------------------------------
if __name__ == "__main__":
    key = jax.random.PRNGKey(0)
    k1, k2, k3, k4, k5, k6 = jax.random.split(key, 6)

    def ref(x, w, b):
        y = jnp.dot(x.reshape(-1, x.shape[-1]), w,
                    precision=jax.lax.Precision.HIGHEST) + b
        return jnp.maximum(y, 0.0).reshape(x.shape[:-1] + (w.shape[1],))

    # Case 1: small EMGSE-style layer (257 -> 128), unaligned M/K, single-K path.
    B, T, K1, N1 = 2, 7, 257, 128
    x1 = jax.random.normal(k1, (B, T, K1), jnp.float32)
    w1 = jax.random.normal(k2, (K1, N1), jnp.float32) / jnp.sqrt(K1)
    b1 = 0.1 * jax.random.normal(k3, (N1,), jnp.float32)
    out1 = jax.block_until_ready(dense_l(x1, w1, b1))
    ref1 = ref(x1, w1, b1)
    assert out1.shape == (B, T, N1), out1.shape
    assert bool(jnp.all(jnp.isfinite(out1)))
    assert bool(jnp.allclose(out1, ref1, atol=3e-2, rtol=2e-2)), (
        float(jnp.max(jnp.abs(out1 - ref1))))

    # Case 2: small shapes but with a tiny VMEM budget to force the multi-K
    # accumulator path and the M-split (two parallel tiles).
    M2, K2, N2 = 132, 644, 200
    x2 = jax.random.normal(k4, (M2, K2), jnp.float32)
    w2 = jax.random.normal(k5, (K2, N2), jnp.float32) / jnp.sqrt(K2)
    b2 = 0.1 * jax.random.normal(k6, (N2,), jnp.float32)
    out2 = jax.block_until_ready(
        dense_l(x2, w2, b2, vmem_budget_bytes=1 * 1024 * 1024))
    ref2 = ref(x2, w2, b2)
    assert out2.shape == (M2, N2), out2.shape
    assert bool(jnp.all(jnp.isfinite(out2)))
    assert bool(jnp.allclose(out2, ref2, atol=3e-2, rtol=2e-2)), (
        float(jnp.max(jnp.abs(out2 - ref2))))

    print("KERNEL_OK")
</pallas_src>

<mosaic_0001>
module attributes {stable_mosaic.version = 11 : i64} {
  func.func @_dense_relu_kernel_1k(%arg0: i32, %arg1: i32, %arg2: memref<16x384xf32, #tpu.memory_space<vmem>>, %arg3: memref<384x128xbf16, #tpu.memory_space<vmem>>, %arg4: memref<1x128xf32, #tpu.memory_space<vmem>>, %arg5: memref<16x128xf32, #tpu.memory_space<vmem>>) attributes {dimension_semantics = [#tpu.dimension_semantics<parallel>, #tpu.dimension_semantics<parallel>], iteration_bounds = array<i64: 1, 1>, scalar_prefetch = 0 : i64, scratch_operands = 0 : i64, tpu.core_type = #tpu.core_type<tc>, window_params = [{transform_indices = @transform_0, window_bounds = array<i64: 16, 384>}, {transform_indices = @transform_1, window_bounds = array<i64: 384, 128>}, {transform_indices = @transform_2, window_bounds = array<i64: 1, 128>}, {transform_indices = @transform_3, window_bounds = array<i64: 16, 128>}]} {
    %c0 = arith.constant 0 : index
    %c0_0 = arith.constant 0 : index
    %0 = vector.load %arg2[%c0, %c0_0] : memref<16x384xf32, #tpu.memory_space<vmem>>, vector<16x384xf32>
    %1 = arith.truncf %0 : vector<16x384xf32> to vector<16x384xbf16>
    %c0_1 = arith.constant 0 : index
    %c0_2 = arith.constant 0 : index
    %2 = vector.load %arg3[%c0_1, %c0_2] : memref<384x128xbf16, #tpu.memory_space<vmem>>, vector<384x128xbf16>
    %cst = arith.constant dense<0.000000e+00> : vector<16x128xf32>
    %3 = tpu.matmul %1, %2, %cst {dimension_numbers = #tpu.dot_dimension_numbers<[1], [0], [0], [1], [0, 0, 1, 1], [], []>} : vector<16x384xbf16>, vector<384x128xbf16>, vector<16x128xf32> -> vector<16x128xf32>
    %c0_3 = arith.constant 0 : index
    %c0_4 = arith.constant 0 : index
    %4 = vector.load %arg4[%c0_3, %c0_4] : memref<1x128xf32, #tpu.memory_space<vmem>>, vector<1x128xf32>
    %5 = vector.broadcast %4 : vector<1x128xf32> to vector<16x128xf32>
    %6 = arith.addf %3, %5 : vector<16x128xf32>
    %cst_5 = arith.constant 0.000000e+00 : f32
    %7 = vector.broadcast %cst_5 : f32 to vector<16x128xf32>
    %8 = arith.maximumf %6, %7 : vector<16x128xf32>
    %c0_6 = arith.constant 0 : index
    %c0_7 = arith.constant 0 : index
    %9 = vector.load %arg5[%c0_6, %c0_7] : memref<16x128xf32, #tpu.memory_space<vmem>>, vector<16x128xf32>
    tpu.vector_store %arg5[%c0_6, %c0_7], %8 {strides = array<i32>} : memref<16x128xf32, #tpu.memory_space<vmem>>, vector<16x128xf32>,
    return
  }
  func.func @transform_0(%arg0: i32, %arg1: i32) -> (i32, i32) {
    %c0_i32 = arith.constant 0 : i32
    %c0_i32_0 = arith.constant 0 : i32
    return %arg0, %c0_i32 : i32, i32
  }
  func.func @transform_1(%arg0: i32, %arg1: i32) -> (i32, i32) {
    %c0_i32 = arith.constant 0 : i32
    %c0_i32_0 = arith.constant 0 : i32
    return %c0_i32, %arg1 : i32, i32
  }
  func.func @transform_2(%arg0: i32, %arg1: i32) -> (i32, i32) {
    %c0_i32 = arith.constant 0 : i32
    %c0_i32_0 = arith.constant 0 : i32
    return %c0_i32, %arg1 : i32, i32
  }
  func.func @transform_3(%arg0: i32, %arg1: i32) -> (i32, i32) {
    %c0_i32 = arith.constant 0 : i32
    return %arg0, %arg1 : i32, i32
  }
}

</mosaic_0001>

<bundles_post_ra>
// kernel: _dense_l_impl.1
= control target key start
LH: loop header
LB: loop body
LE: loop exit
PB: predicated region body
PF: predicated region fallthrough
CT: control target
= control target key end

     0   :  { %v415_v1 = vmov 0.0   ;;  %vm416_vm0 = vmmov 0   ;;  %s545_s1 = inlined_call_operand.vmem [shape: bf16[384,128], index: 1, kind: input, shape index: {}]   ;;  %s546_s0 = inlined_call_operand.vmem [shape: f32[16,384], index: 0, kind: input, shape index: {}]   ;;  %s547_s2 = inlined_call_operand.vmem [shape: f32[1,128], index: 2, kind: input, shape index: {}]   ;;  %s548_s3 = inlined_call_operand.vmem [shape: f32[16,128], index: 3, kind: output, shape index: {}]  }
   0x1   :  { %v391_v0 = vld [vmem:[%s545_s1 + $0x40] sm:$0xff]   ;;  %369 = vmatprep.subr.bf16.mxu1 %v415_v1  ;;  %385 = vmatprep.mubr.msk.bf16.mxu1 %vm416_vm0, %v415_v1  ;;  %v394_v4 = vld [vmem:[%s545_s1 + $0x48] sm:$0xff]   ;;  %v397_v7 = vld [vmem:[%s545_s1 + $0x50] sm:$0xff]  }
   0x2   :  { %v392_v2 = vld [vmem:[%s545_s1] sm:$0xff]   ;;  %338 = vmatprep.subr.bf16.mxu0 %v391_v0  ;;  %v395_v5 = vld [vmem:[%s545_s1 + $0x8] sm:$0xff]   ;;  %v398_v8 = vld [vmem:[%s545_s1 + $0x10] sm:$0xff]  }
   0x3   :  { %v393_v3 = vld [vmem:[%s545_s1 + $0x80] sm:$0xff]   ;;  %339 = vmatpush3.bf16.msra.mxu0 %v392_v2  ;;  %v396_v6 = vld [vmem:[%s545_s1 + $0x88] sm:$0xff]   ;;  %v399_v9 = vld [vmem:[%s545_s1 + $0x90] sm:$0xff]  }
   0x4   :  { %370 = vmatpush3.bf16.msra.mxu1 %v393_v3  ;;  %340 = vmatprep.subr.bf16.mxu0 %v394_v4  ;;  %v400_v10 = vld [vmem:[%s545_s1 + $0x58] sm:$0xff]   ;;  %v403_v13 = vld [vmem:[%s545_s1 + $0x60] sm:$0xff]   ;;  %v406_v16 = vld [vmem:[%s545_s1 + $0x68] sm:$0xff]  }
   0x5   :  { %371 = vmatprep.subr.bf16.mxu1 %v415_v1  ;;  %v401_v11 = vld [vmem:[%s545_s1 + $0x18] sm:$0xff]   ;;  %v404_v14 = vld [vmem:[%s545_s1 + $0x20] sm:$0xff]   ;;  %v407_v17 = vld [vmem:[%s545_s1 + $0x28] sm:$0xff]  }
   0x6   :  { %v402_v12 = vld [vmem:[%s545_s1 + $0x98] sm:$0xff]   ;;  %v405_v15 = vld [vmem:[%s545_s1 + $0xa0] sm:$0xff]   ;;  %v408_v18 = vld [vmem:[%s545_s1 + $0xa8] sm:$0xff]  }
   0x7   :  { %341 = vmatpush3.bf16.msra.mxu0 %v395_v5  ;;  %v409_v19 = vld [vmem:[%s545_s1 + $0x70] sm:$0xff]   ;;  %v16_v21 = vld [vmem:[%s546_s0 + $0x8] sm:$0xff]  ;;  %v19_v22 = vld [vmem:[%s546_s0 + $0x20] sm:$0xff] }
   0x8   :  { %372 = vmatpush3.bf16.msra.mxu1 %v396_v6  ;;  %342 = vmatprep.subr.bf16.mxu0 %v397_v7  ;;  %v410_v20 = vld [vmem:[%s545_s1 + $0x30] sm:$0xff]   ;;  %v412_v24 = vld [vmem:[%s545_s1 + $0x78] sm:$0xff]   ;;  %v22_v25 = vpack.c.bf16 %v19_v22, %v16_v21  ;;  %v15_v27 = vld [vmem:[%s546_s0] sm:$0xff] }
   0x9   :  { %373 = vmatprep.subr.bf16.mxu1 %v415_v1  ;;  %v411_v23 = vld [vmem:[%s545_s1 + $0xb0] sm:$0xff]   ;;  %v413_v26 = vld [vmem:[%s545_s1 + $0x38] sm:$0xff]   ;;  %v20_v31 = vld [vmem:[%s546_s0 + $0x28] sm:$0xff] }
   0xa   :  { %255 = vmatprep.mubr.bf16.mxu0 %v22_v25  ;;  %v18_v28 = vld [vmem:[%s546_s0 + $0x18] sm:$0xff]  ;;  %v17_v30 = vld [vmem:[%s546_s0 + $0x10] sm:$0xff]  ;;  %v313_v36 = vld [vmem:[%s547_s2] ss:$0 sm:$0xff] }
   0xb   :  { %343 = vmatpush3.bf16.msra.mxu0 %v398_v8  ;;  %v414_v29 = vld [vmem:[%s545_s1 + $0xb8] sm:$0xff]   ;;  %v21_v32 = vpack.c.bf16 %v18_v28, %v15_v27  ;;  %v23_v33 = vpack.c.bf16 %v20_v31, %v17_v30 }
   0xc   :  { %374 = vmatpush3.bf16.msra.mxu1 %v399_v9  ;;  %344 = vmatprep.subr.bf16.mxu0 %v400_v10 }
   0xd   :  { %375 = vmatprep.subr.bf16.mxu1 %v415_v1 }
   0xf   :  { %345 = vmatpush3.bf16.msra.mxu0 %v401_v11 }
  0x10   :  { %376 = vmatpush3.bf16.msra.mxu1 %v402_v12  ;;  %346 = vmatprep.subr.bf16.mxu0 %v403_v13 }
  0x11   :  { %377 = vmatprep.subr.bf16.mxu1 %v415_v1 }
  0x13   :  { %347 = vmatpush3.bf16.msra.mxu0 %v404_v14 }
  0x14   :  { %378 = vmatpush3.bf16.msra.mxu1 %v405_v15  ;;  %348 = vmatprep.subr.bf16.mxu0 %v406_v16 }
  0x15   :  { %379 = vmatprep.subr.bf16.mxu1 %v415_v1 }
  0x17   :  { %349 = vmatpush3.bf16.msra.mxu0 %v407_v17 }
  0x18   :  { %380 = vmatpush3.bf16.msra.mxu1 %v408_v18  ;;  %350 = vmatprep.subr.bf16.mxu0 %v409_v19 }
  0x19   :  { %381 = vmatprep.subr.bf16.mxu1 %v415_v1 }
  0x1b   :  { %351 = vmatpush3.bf16.msra.mxu0 %v410_v20 }
  0x1c   :  { %382 = vmatpush3.bf16.msra.mxu1 %v411_v23  ;;  %352 = vmatprep.subr.bf16.mxu0 %v412_v24 }
  0x1d   :  { %383 = vmatprep.subr.bf16.mxu1 %v415_v1 }
  0x1f   :  { %353 = vmatpush3.bf16.msra.mxu0 %v413_v26 }
  0x20   :  { %384 = vmatpush3.bf16.msra.mxu1 %v414_v29 }
  0x22   :  { %256 = vmatmul.mubr.bf16.vlgmr.msra.gmra.mrb[0].mxu0 %v21_v32 }
  0x23   :  { %386 = vmatmul.mubr.bf16.vlgmr.msra.gmra.mrb[0].mxu1 %v23_v33 }
  0xf5   :  { %v354_v34 = vpop.f32.mrb[0].mxu0 }
  0xf6   :  { %v355_v35 = vpop.f32.mrb[1].mxu0  ;;  %v298_v37 = vpop.f32.mrb[0].mxu1 }
  0xf7   :  { %v356_v38 = vadd.f32 %v355_v35, %v354_v34  ;;  %v357_v39 = vpop.f32.mrb[2].mxu0  ;;  %v387_v40 = vpop.f32.mrb[1].mxu1 }
  0xf8   :  { %v358_v41 = vpop.f32.mrb[3].mxu0  ;;  %v301_v42 = vpop.f32.mrb[2].mxu1 }
  0xf9   :  { %v258_v43 = vadd.f32 %v356_v38, %v313_v36  ;;  %v359_v44 = vadd.f32 %v358_v41, %v357_v39  ;;  %v388_v45 = vpop.f32.mrb[3].mxu1 }
  0xfb   :  { %v299_v46 = vadd.f32 %v298_v37, %v258_v43  ;;  %v261_v47 = vadd.f32 %v359_v44, %v313_v36 }
  0xfd   :  { %v305_v48 = vmax.f32 %v299_v46, 0.0  ;;  %v302_v49 = vadd.f32 %v301_v42, %v261_v47 }
  0xff   :  { %307 = vst [vmem:[%s548_s3] sm:$0xff] %v305_v48  ;;  %v306_v50 = vmax.f32 %v302_v49, 0.0 }
 0x101   :  { %308 = vst [vmem:[%s548_s3 + $0x8] sm:$0xff] %v306_v50 }

</bundles_post_ra>
